<compile_context>
chip_gen: v7x
topology: tpu7x:2x2x1
jax: 0.10.0
libtpu: 0.0.40
codegen_flags: <defaults>
</compile_context>

<pallas_src>
import numpy as np
import jax
import jax.numpy as jnp
from jax.experimental import pallas as pl
from jax.experimental.pallas import tpu as pltpu

# ---------------- model dims (small, consistent with the module) ----------------
BATCH = 8
TAB_DIM = 16
TEXT_DIM = 32
IMG_DIM = (3, 16, 16)          # NCHW stand-in for (3, 224, 224)
IMG_FLAT = int(np.prod(IMG_DIM))
META_DIM = 3
META_ROWS = 8                  # meta K padded to a full 8-sublane f32 tile
HID = 64
NUM_CLASSES = 3
OUT_PAD = 128                  # lane-dense padded output width (multiple of 128)

# Row offsets of each segment inside the packed (W_SLAB_ROWS, HID) f32 weight slab.
# Every offset is a multiple of 8, so every in-kernel slice is tile-aligned.
SEG_WT = 0                     # (TAB_DIM, 64)   tabular encoder
SEG_WX = SEG_WT + TAB_DIM      # (TEXT_DIM, 64)  text encoder
SEG_WM = SEG_WX + TEXT_DIM     # (META_ROWS, 64) meta encoder (3 real + 5 zero rows)
SEG_WVO = SEG_WM + META_ROWS   # (64, 64)        folded attention Wv @ Wo
SEG_WC1 = SEG_WVO + HID        # (256, 64)       classifier layer 1
W_SLAB_ROWS = SEG_WC1 + 4 * HID  # 376 rows total

# Bias-pack row assignments inside the single (8, 128) f32 bias tile.
B_T, B_X, B_M, B_VO, B_C1, B_C2 = 0, 1, 2, 3, 4, 5


def model_kernel(tab_ref, txt_ref, meta_ref, w_ref, b_ref, wc2_ref, out_ref):
    f32 = jnp.float32

    def mm(x, row0, rows):
        # Static, tile-aligned row slice of the packed weight slab (zero cost).
        return jnp.dot(x, w_ref[row0:row0 + rows, :], preferred_element_type=f32)

    def bias(row, width=HID):
        return b_ref[row:row + 1, 0:width]

    # --- per-modality encoders -------------------------------------------------
    t = jnp.maximum(mm(tab_ref[...], SEG_WT, TAB_DIM) + bias(B_T), 0.0)   # TabularEncoder
    x = jnp.maximum(mm(txt_ref[...], SEG_WX, TEXT_DIM) + bias(B_X), 0.0)  # TextEncoder
    m = mm(meta_ref[...], SEG_WM, META_ROWS) + bias(B_M)                  # meta Linear (no ReLU)
    # image encoder intentionally omitted: its result never reaches the
    # classifier in the module forward (dead branch).

    # --- cross-modal attention, seq_len == 1 -----------------------------------
    # softmax over a single key position is identically 1 => attn_out == v,
    # and the v / out projections are folded offline into one f32 matmul.
    fusion = mm(x, SEG_WVO, HID) + bias(B_VO)

    # --- classifier: cat([fusion, t, x, m]) @ Wc1 == sum of 64-row block matmuls
    h = (mm(fusion, SEG_WC1 + 0 * HID, HID)
         + mm(t,    SEG_WC1 + 1 * HID, HID)
         + mm(x,    SEG_WC1 + 2 * HID, HID)
         + mm(m,    SEG_WC1 + 3 * HID, HID)
         + bias(B_C1))
    h = jnp.maximum(h, 0.0)

    # --- classifier layer 2 into a lane-dense (B, OUT_PAD) output ---------------
    out_ref[...] = (jnp.dot(h, wc2_ref[...], preferred_element_type=f32)
                    + bias(B_C2, OUT_PAD))


def _vmem_spec():
    return pl.BlockSpec(memory_space=pltpu.MemorySpace.VMEM)


# ---------------- one-time parameter packing (hoisted out of the call path) ----
def pack_params(params):
    f32 = jnp.float32

    def seg(w, rows):
        w = jnp.asarray(w, f32)
        return jnp.pad(w, ((0, rows - w.shape[0]), (0, 0)))

    # Fold the affine attention chain offline (f32): out_proj(v_proj(x)).
    wvo = jnp.asarray(params["wv"], f32) @ jnp.asarray(params["wo"], f32)
    bvo = jnp.asarray(params["bv"], f32) @ jnp.asarray(params["wo"], f32) \
        + jnp.asarray(params["bo"], f32)

    w_slab = jnp.concatenate([
        seg(params["wt"], TAB_DIM),
        seg(params["wx"], TEXT_DIM),
        seg(params["wm"], META_ROWS),
        seg(wvo, HID),
        seg(params["wc1"], 4 * HID),
    ], axis=0)
    assert w_slab.shape == (W_SLAB_ROWS, HID)

    b_pack = jnp.zeros((8, OUT_PAD), f32)
    b_pack = b_pack.at[B_T, :HID].set(jnp.asarray(params["bt"], f32)[0])
    b_pack = b_pack.at[B_X, :HID].set(jnp.asarray(params["bx"], f32)[0])
    b_pack = b_pack.at[B_M, :HID].set(jnp.asarray(params["bm"], f32)[0])
    b_pack = b_pack.at[B_VO, :HID].set(bvo[0])
    b_pack = b_pack.at[B_C1, :HID].set(jnp.asarray(params["bc1"], f32)[0])
    b_pack = b_pack.at[B_C2, :NUM_CLASSES].set(jnp.asarray(params["bc2"], f32)[0])

    wc2p = jnp.pad(jnp.asarray(params["wc2"], f32),
                   ((0, 0), (0, OUT_PAD - NUM_CLASSES)))

    return {"w_slab": w_slab, "b_pack": b_pack, "wc2p": wc2p}


@jax.jit
def dummy_multimodal_forward(tabular, text, image, metadata, packed):
    # `image` accepted for API parity with the PyTorch forward, but its encoding
    # never feeds the classifier, so it is not DMA'd into the kernel at all.
    del image
    B = tabular.shape[0]
    # Pad meta K from 3 -> 8 so its weight slice stays tile-aligned (zero rows/cols
    # contribute exactly zero). Under jit this pad fuses into the device program.
    meta_p = jnp.pad(metadata, ((0, 0), (0, META_ROWS - META_DIM)))

    # Single invocation (no grid): total footprint < 150 KiB of VMEM.
    # TODO(synk): if per-call batch grows to several hundred rows, add a batch
    # grid axis with dimension_semantics=("parallel",) to use both v7x TCs.
    out_padded = pl.pallas_call(
        model_kernel,
        out_shape=jax.ShapeDtypeStruct((B, OUT_PAD), jnp.float32),
        in_specs=[_vmem_spec() for _ in range(6)],
        out_specs=_vmem_spec(),
    )(tabular, text, meta_p, packed["w_slab"], packed["b_pack"], packed["wc2p"])
    return out_padded[:, :NUM_CLASSES]


# ---------------- deterministic parameter init (PyTorch Linear-style, f32) -----
def _linear_params(key, fan_in, fan_out):
    kw, kb = jax.random.split(key)
    bound = 1.0 / np.sqrt(fan_in)
    w = jax.random.uniform(kw, (fan_in, fan_out), jnp.float32, -bound, bound)
    b = jax.random.uniform(kb, (1, fan_out), jnp.float32, -bound, bound)
    return w, b


def init_params(key):
    keys = jax.random.split(key, 10)
    p = {}
    p["wt"], p["bt"] = _linear_params(keys[0], TAB_DIM, HID)
    p["wx"], p["bx"] = _linear_params(keys[1], TEXT_DIM, HID)
    p["wi"], p["bi"] = _linear_params(keys[2], IMG_FLAT, HID)   # reference-only (dead branch)
    p["wm"], p["bm"] = _linear_params(keys[3], META_DIM, HID)
    p["wq"], p["bq"] = _linear_params(keys[4], HID, HID)        # reference-only (seq_len == 1)
    p["wk"], p["bk"] = _linear_params(keys[5], HID, HID)        # reference-only (seq_len == 1)
    p["wv"], p["bv"] = _linear_params(keys[6], HID, HID)
    p["wo"], p["bo"] = _linear_params(keys[7], HID, HID)
    p["wc1"], p["bc1"] = _linear_params(keys[8], 4 * HID, HID)
    p["wc2"], p["bc2"] = _linear_params(keys[9], HID, NUM_CLASSES)
    return p


# ---------------- pure-JAX reference: FULL original forward math ----------------
def reference_forward(tabular, text, image, metadata, params):
    w = {k: jnp.asarray(v, jnp.float32) for k, v in params.items()}
    t = jnp.maximum(tabular @ w["wt"] + w["bt"], 0.0)
    x = jnp.maximum(text @ w["wx"] + w["bx"], 0.0)
    _i = jnp.maximum(image.reshape(image.shape[0], -1) @ w["wi"] + w["bi"], 0.0)  # computed, unused (as in module)
    m = metadata @ w["wm"] + w["bm"]
    # CrossModalAttention with seq_len == 1 (the .unsqueeze(1) in forward)
    q = t @ w["wq"] + w["bq"]
    k = x @ w["wk"] + w["bk"]
    v = x @ w["wv"] + w["bv"]
    score = jnp.sum(q * k, axis=-1, keepdims=True) / np.sqrt(HID)   # (B, 1): one key position
    attn_w = jax.nn.softmax(score, axis=-1)                         # softmax over a single key == 1
    fusion = (attn_w * v) @ w["wo"] + w["bo"]
    combined = jnp.concatenate([fusion, t, x, m], axis=1)
    h = jnp.maximum(combined @ w["wc1"] + w["bc1"], 0.0)
    return h @ w["wc2"] + w["bc2"]


if __name__ == "__main__":
    key = jax.random.PRNGKey(0)
    k_tab, k_txt, k_img, k_meta, k_par = jax.random.split(key, 5)

    tabular = jax.random.normal(k_tab, (BATCH, TAB_DIM), jnp.float32)
    text = jax.random.normal(k_txt, (BATCH, TEXT_DIM), jnp.float32)
    image = jax.random.normal(k_img, (BATCH,) + IMG_DIM, jnp.float32)   # NCHW
    metadata = jax.random.normal(k_meta, (BATCH, META_DIM), jnp.float32)

    params = init_params(k_par)
    packed = pack_params(params)          # one-time packing, outside the call path

    out = dummy_multimodal_forward(tabular, text, image, metadata, packed)
    out = jax.block_until_ready(out)

    ref = reference_forward(tabular, text, image, metadata, params)
    assert out.shape == (BATCH, NUM_CLASSES)
    np.testing.assert_allclose(np.asarray(out), np.asarray(ref), rtol=1e-5, atol=1e-5)

    print("KERNEL_OK")
</pallas_src>

<mosaic_0001>
module attributes {stable_mosaic.version = 11 : i64} {
  func.func @model_kernel(%arg0: memref<8x16xf32, #tpu.memory_space<vmem>>, %arg1: memref<8x32xf32, #tpu.memory_space<vmem>>, %arg2: memref<8x8xf32, #tpu.memory_space<vmem>>, %arg3: memref<376x64xf32, #tpu.memory_space<vmem>>, %arg4: memref<8x128xf32, #tpu.memory_space<vmem>>, %arg5: memref<64x128xf32, #tpu.memory_space<vmem>>, %arg6: memref<8x128xf32, #tpu.memory_space<vmem>>) attributes {dimension_semantics = [], scalar_prefetch = 0 : i64, scratch_operands = 0 : i64, tpu.core_type = #tpu.core_type<tc>} {
    %c0 = arith.constant 0 : index
    %c0_0 = arith.constant 0 : index
    %0 = vector.load %arg0[%c0, %c0_0] : memref<8x16xf32, #tpu.memory_space<vmem>>, vector<8x16xf32>
    %c0_1 = arith.constant 0 : index
    %c0_2 = arith.constant 0 : index
    %1 = vector.load %arg3[%c0_1, %c0_2] : memref<376x64xf32, #tpu.memory_space<vmem>>, vector<16x64xf32>
    %cst = arith.constant dense<0.000000e+00> : vector<8x64xf32>
    %2 = tpu.matmul %0, %1, %cst {dimension_numbers = #tpu.dot_dimension_numbers<[1], [0], [0], [1], [0, 0, 1, 1], [], []>} : vector<8x16xf32>, vector<16x64xf32>, vector<8x64xf32> -> vector<8x64xf32>
    %c0_3 = arith.constant 0 : index
    %c0_4 = arith.constant 0 : index
    %3 = vector.load %arg4[%c0_3, %c0_4] : memref<8x128xf32, #tpu.memory_space<vmem>>, vector<1x64xf32>
    %4 = vector.broadcast %3 : vector<1x64xf32> to vector<8x64xf32>
    %5 = arith.addf %2, %4 : vector<8x64xf32>
    %cst_5 = arith.constant 0.000000e+00 : f32
    %6 = vector.broadcast %cst_5 : f32 to vector<8x64xf32>
    %7 = arith.maximumf %5, %6 : vector<8x64xf32>
    %c0_6 = arith.constant 0 : index
    %c0_7 = arith.constant 0 : index
    %8 = vector.load %arg1[%c0_6, %c0_7] : memref<8x32xf32, #tpu.memory_space<vmem>>, vector<8x32xf32>
    %c16 = arith.constant 16 : index
    %c0_8 = arith.constant 0 : index
    %9 = vector.load %arg3[%c16, %c0_8] : memref<376x64xf32, #tpu.memory_space<vmem>>, vector<32x64xf32>
    %cst_9 = arith.constant dense<0.000000e+00> : vector<8x64xf32>
    %10 = tpu.matmul %8, %9, %cst_9 {dimension_numbers = #tpu.dot_dimension_numbers<[1], [0], [0], [1], [0, 0, 1, 1], [], []>} : vector<8x32xf32>, vector<32x64xf32>, vector<8x64xf32> -> vector<8x64xf32>
    %c1 = arith.constant 1 : index
    %c0_10 = arith.constant 0 : index
    %11 = vector.load %arg4[%c1, %c0_10] : memref<8x128xf32, #tpu.memory_space<vmem>>, vector<1x64xf32>
    %12 = vector.broadcast %11 : vector<1x64xf32> to vector<8x64xf32>
    %13 = arith.addf %10, %12 : vector<8x64xf32>
    %cst_11 = arith.constant 0.000000e+00 : f32
    %14 = vector.broadcast %cst_11 : f32 to vector<8x64xf32>
    %15 = arith.maximumf %13, %14 : vector<8x64xf32>
    %c0_12 = arith.constant 0 : index
    %c0_13 = arith.constant 0 : index
    %16 = vector.load %arg2[%c0_12, %c0_13] : memref<8x8xf32, #tpu.memory_space<vmem>>, vector<8x8xf32>
    %c48 = arith.constant 48 : index
    %c0_14 = arith.constant 0 : index
    %17 = vector.load %arg3[%c48, %c0_14] : memref<376x64xf32, #tpu.memory_space<vmem>>, vector<8x64xf32>
    %cst_15 = arith.constant dense<0.000000e+00> : vector<8x64xf32>
    %18 = tpu.matmul %16, %17, %cst_15 {dimension_numbers = #tpu.dot_dimension_numbers<[1], [0], [0], [1], [0, 0, 1, 1], [], []>} : vector<8x8xf32>, vector<8x64xf32>, vector<8x64xf32> -> vector<8x64xf32>
    %c2 = arith.constant 2 : index
    %c0_16 = arith.constant 0 : index
    %19 = vector.load %arg4[%c2, %c0_16] : memref<8x128xf32, #tpu.memory_space<vmem>>, vector<1x64xf32>
    %20 = vector.broadcast %19 : vector<1x64xf32> to vector<8x64xf32>
    %21 = arith.addf %18, %20 : vector<8x64xf32>
    %c56 = arith.constant 56 : index
    %c0_17 = arith.constant 0 : index
    %22 = vector.load %arg3[%c56, %c0_17] : memref<376x64xf32, #tpu.memory_space<vmem>>, vector<64x64xf32>
    %cst_18 = arith.constant dense<0.000000e+00> : vector<8x64xf32>
    %23 = tpu.matmul %15, %22, %cst_18 {dimension_numbers = #tpu.dot_dimension_numbers<[1], [0], [0], [1], [0, 0, 1, 1], [], []>} : vector<8x64xf32>, vector<64x64xf32>, vector<8x64xf32> -> vector<8x64xf32>
    %c3 = arith.constant 3 : index
    %c0_19 = arith.constant 0 : index
    %24 = vector.load %arg4[%c3, %c0_19] : memref<8x128xf32, #tpu.memory_space<vmem>>, vector<1x64xf32>
    %25 = vector.broadcast %24 : vector<1x64xf32> to vector<8x64xf32>
    %26 = arith.addf %23, %25 : vector<8x64xf32>
    %c120 = arith.constant 120 : index
    %c0_20 = arith.constant 0 : index
    %27 = vector.load %arg3[%c120, %c0_20] : memref<376x64xf32, #tpu.memory_space<vmem>>, vector<64x64xf32>
    %cst_21 = arith.constant dense<0.000000e+00> : vector<8x64xf32>
    %28 = tpu.matmul %26, %27, %cst_21 {dimension_numbers = #tpu.dot_dimension_numbers<[1], [0], [0], [1], [0, 0, 1, 1], [], []>} : vector<8x64xf32>, vector<64x64xf32>, vector<8x64xf32> -> vector<8x64xf32>
    %c184 = arith.constant 184 : index
    %c0_22 = arith.constant 0 : index
    %29 = vector.load %arg3[%c184, %c0_22] : memref<376x64xf32, #tpu.memory_space<vmem>>, vector<64x64xf32>
    %cst_23 = arith.constant dense<0.000000e+00> : vector<8x64xf32>
    %30 = tpu.matmul %7, %29, %cst_23 {dimension_numbers = #tpu.dot_dimension_numbers<[1], [0], [0], [1], [0, 0, 1, 1], [], []>} : vector<8x64xf32>, vector<64x64xf32>, vector<8x64xf32> -> vector<8x64xf32>
    %31 = arith.addf %28, %30 : vector<8x64xf32>
    %c248 = arith.constant 248 : index
    %c0_24 = arith.constant 0 : index
    %32 = vector.load %arg3[%c248, %c0_24] : memref<376x64xf32, #tpu.memory_space<vmem>>, vector<64x64xf32>
    %cst_25 = arith.constant dense<0.000000e+00> : vector<8x64xf32>
    %33 = tpu.matmul %15, %32, %cst_25 {dimension_numbers = #tpu.dot_dimension_numbers<[1], [0], [0], [1], [0, 0, 1, 1], [], []>} : vector<8x64xf32>, vector<64x64xf32>, vector<8x64xf32> -> vector<8x64xf32>
    %34 = arith.addf %31, %33 : vector<8x64xf32>
    %c312 = arith.constant 312 : index
    %c0_26 = arith.constant 0 : index
    %35 = vector.load %arg3[%c312, %c0_26] : memref<376x64xf32, #tpu.memory_space<vmem>>, vector<64x64xf32>
    %cst_27 = arith.constant dense<0.000000e+00> : vector<8x64xf32>
    %36 = tpu.matmul %21, %35, %cst_27 {dimension_numbers = #tpu.dot_dimension_numbers<[1], [0], [0], [1], [0, 0, 1, 1], [], []>} : vector<8x64xf32>, vector<64x64xf32>, vector<8x64xf32> -> vector<8x64xf32>
    %37 = arith.addf %34, %36 : vector<8x64xf32>
    %c4 = arith.constant 4 : index
    %c0_28 = arith.constant 0 : index
    %38 = vector.load %arg4[%c4, %c0_28] : memref<8x128xf32, #tpu.memory_space<vmem>>, vector<1x64xf32>
    %39 = vector.broadcast %38 : vector<1x64xf32> to vector<8x64xf32>
    %40 = arith.addf %37, %39 : vector<8x64xf32>
    %cst_29 = arith.constant 0.000000e+00 : f32
    %41 = vector.broadcast %cst_29 : f32 to vector<8x64xf32>
    %42 = arith.maximumf %40, %41 : vector<8x64xf32>
    %c0_30 = arith.constant 0 : index
    %c0_31 = arith.constant 0 : index
    %43 = vector.load %arg5[%c0_30, %c0_31] : memref<64x128xf32, #tpu.memory_space<vmem>>, vector<64x128xf32>
    %cst_32 = arith.constant dense<0.000000e+00> : vector<8x128xf32>
    %44 = tpu.matmul %42, %43, %cst_32 {dimension_numbers = #tpu.dot_dimension_numbers<[1], [0], [0], [1], [0, 0, 1, 1], [], []>} : vector<8x64xf32>, vector<64x128xf32>, vector<8x128xf32> -> vector<8x128xf32>
    %c5 = arith.constant 5 : index
    %c0_33 = arith.constant 0 : index
    %45 = vector.load %arg4[%c5, %c0_33] : memref<8x128xf32, #tpu.memory_space<vmem>>, vector<1x128xf32>
    %46 = vector.broadcast %45 : vector<1x128xf32> to vector<8x128xf32>
    %47 = arith.addf %44, %46 : vector<8x128xf32>
    %c0_34 = arith.constant 0 : index
    %c0_35 = arith.constant 0 : index
    %48 = vector.load %arg6[%c0_34, %c0_35] : memref<8x128xf32, #tpu.memory_space<vmem>>, vector<8x128xf32>
    tpu.vector_store %arg6[%c0_34, %c0_35], %47 {strides = array<i32>} : memref<8x128xf32, #tpu.memory_space<vmem>>, vector<8x128xf32>,
    return
  }
}

</mosaic_0001>

<bundles_post_ra>
// kernel: dummy_multimodal_forward.1
= control target key start
LH: loop header
LB: loop body
LE: loop exit
PB: predicated region body
PF: predicated region fallthrough
CT: control target
= control target key end

     0   :  { %v1080_v0 = vmov 0.0|0.0   ;;  %vm1081_vm0 = vmmov 0   ;;  %v1082_v6 = vmov 0.0   ;;  %vm31_vm1 = vcmask 130048   ;;  %s1368_s3 = inlined_call_operand.vmem [shape: f32[376,64], index: 3, kind: input, shape index: {}]   ;;  %s1369_s0 = inlined_call_operand.vmem [shape: f32[8,16], index: 0, kind: input, shape index: {}]   ;;  %s1370_s2 = inlined_call_operand.vmem [shape: f32[8,8], index: 2, kind: input, shape index: {}]   ;;  %s1371_s1 = inlined_call_operand.vmem [shape: f32[8,32], index: 1, kind: input, shape index: {}]   ;;  %s1372_s4 = inlined_call_operand.vmem [shape: f32[8,128], index: 4, kind: input, shape index: {}]   ;;  %s1373_s5 = inlined_call_operand.vmem [shape: f32[64,128], index: 5, kind: input, shape index: {}]   ;;  %s1374_s6 = inlined_call_operand.vmem [shape: f32[8,128], index: 6, kind: output, shape index: {}]  }
   0x1   :  { %996 = vmatprep.subr.bf16.mxu0 %v1080_v0  ;;  %999 = vmatprep.subr.bf16.mxu1 %v1080_v0  ;;  %v24_v1 = vld [vmem:[%s1368_s3] sm:$0xff]  ;;  %v25_v2 = vld [vmem:[%s1368_s3 + $0x8] sm:$0xff]  ;;  %v107_v3 = vld [vmem:[%s1368_s3 + $0x10] sm:$0xff]  ;;  %vm198_vm2 = vcmask 64512   ;;  %vm116_vm3 = vcmask 261120   ;;  %vm285_vm4 = vcmask 523264  }
   0x2   :  { %v997_v4 = vpack.c.bf16 %v25_v2, %v24_v1  ;;  %v108_v5 = vld [vmem:[%s1368_s3 + $0x18] sm:$0xff]  ;;  %863 = vmatprep.mubr.msk.f32.mxu0 %vm1081_vm0, %v1082_v6  ;;  %v109_v7 = vld [vmem:[%s1368_s3 + $0x20] sm:$0xff]  ;;  %874 = vmatprep.mubr.msk.f32.mxu1 %vm1081_vm0, %v1082_v6  ;;  %v110_v9 = vld [vmem:[%s1368_s3 + $0x28] sm:$0xff] }
   0x3   :  { %v1000_v8 = vpack.c.bf16 %v108_v5, %v107_v3  ;;  %v23_v10 = vld [vmem:[%s1369_s0] sm:$0xff]  ;;  %v1003_v11 = vpack.c.bf16 %v110_v9, %v109_v7  ;;  %v192_v12 = vld [vmem:[%s1368_s3 + $0x30] sm:$0xff]  ;;  %v272_v13 = vld [vmem:[%s1368_s3 + $0x38] sm:$0xff] }
   0x4   :  { %998 = vmatpush3.bf16.msra.mxu0 %v997_v4  ;;  %v367_v14 = vld [vmem:[%s1368_s3 + $0xb8] sm:$0xff]  ;;  %v368_v15 = vld [vmem:[%s1368_s3 + $0xc0] sm:$0xff]  ;;  %v274_v21 = vld [vmem:[%s1368_s3 + $0x48] sm:$0xff] }
   0x5   :  { %1001 = vmatpush3.bf16.msra.mxu1 %v1000_v8  ;;  %877 = vmatprep.subr.mxu0 %v1082_v6  ;;  %v273_v16 = vld [vmem:[%s1368_s3 + $0x40] sm:$0xff]  ;;  %v1018_v20 = vpack.c.bf16 %v368_v15, %v367_v14  ;;  %v275_v22 = vld [vmem:[%s1368_s3 + $0x50] sm:$0xff]  ;;  %v369_v23 = vld [vmem:[%s1368_s3 + $0xc8] sm:$0xff] }
   0x6   :  { %1002 = vmatprep.subr.bf16.mxu1 %v1080_v0  ;;  %v191_v17 = vld [vmem:[%s1370_s2] sm:$0xff]  ;;  %v1006_v18 = vpack.c.bf16 %v273_v16, %v272_v13  ;;  %v370_v24 = vld [vmem:[%s1368_s3 + $0xd0] sm:$0xff]  ;;  %v1009_v25 = vpack.c.bf16 %v275_v22, %v274_v21  ;;  %v371_v27 = vld [vmem:[%s1368_s3 + $0xd8] sm:$0xff] }
   0x7   :  { %864 = vmatmul.mubr.msk.f32.vlgmr.msra.gmra.mrb[0].mxu0 %vm31_vm1, %v23_v10  ;;  %v106_v19 = vld [vmem:[%s1371_s1] sm:$0xff]  ;;  %v1021_v26 = vpack.c.bf16 %v370_v24, %v369_v23  ;;  %v373_v30 = vld [vmem:[%s1368_s3 + $0xe8] sm:$0xff]  ;;  %v374_v31 = vld [vmem:[%s1368_s3 + $0xf0] sm:$0xff] }
   0x8   :  { %878 = vmatpush3.msra.mxu0 %v192_v12  ;;  %879 = vmatprep.mubr.msk.f32.mxu0 %vm1081_vm0, %v1082_v6  ;;  %v372_v28 = vld [vmem:[%s1368_s3 + $0xe0] sm:$0xff]  ;;  %v1027_v32 = vpack.c.bf16 %v374_v31, %v373_v30  ;;  %v276_v33 = vld [vmem:[%s1368_s3 + $0x58] sm:$0xff]  ;;  %v278_v36 = vld [vmem:[%s1368_s3 + $0x68] sm:$0xff] }
   0x9   :  { %1004 = vmatpush3.bf16.msra.mxu1 %v1003_v11  ;;  %1005 = vmatprep.subr.bf16.mxu0 %v1080_v0  ;;  %v1024_v29 = vpack.c.bf16 %v372_v28, %v371_v27  ;;  %v277_v34 = vld [vmem:[%s1368_s3 + $0x60] sm:$0xff]  ;;  %v279_v37 = vld [vmem:[%s1368_s3 + $0x70] sm:$0xff]  ;;  %v521_v40 = vld [vmem:[%s1368_s3 + $0xf8] sm:$0xff] }
   0xa   :  { %1017 = vmatprep.subr.bf16.mxu1 %v1080_v0  ;;  %v1012_v35 = vpack.c.bf16 %v277_v34, %v276_v33  ;;  %v1015_v38 = vpack.c.bf16 %v279_v37, %v278_v36  ;;  %v780_v39 = vld [vmem:[%s1372_s4] ss:$0 sm:$0xff]  ;;  %v782_v47 = vld [vmem:[%s1372_s4 + $0x1] ss:$0 sm:$0xff]  ;;  %v523_v48 = vld [vmem:[%s1368_s3 + $0x108] sm:$0xff] }
   0xb   :  { %880 = vmatmul.mubr.msk.f32.vlgmr.msra.gmra.mrb[2].mxu0 %vm198_vm2, %v191_v17  ;;  %v522_v41 = vld [vmem:[%s1368_s3 + $0x100] sm:$0xff]  ;;  %v524_v49 = vld [vmem:[%s1368_s3 + $0x110] sm:$0xff]  ;;  %v359_v51 = vld [vmem:[%s1368_s3 + $0x78] sm:$0xff] }
   0xc   :  { %875 = vmatmul.mubr.msk.f32.vlgmr.msra.gmra.mrb[0].mxu1 %vm116_vm3, %v106_v19  ;;  %1007 = vmatpush3.bf16.msra.mxu0 %v1006_v18  ;;  %v1042_v45 = vpack.c.bf16 %v522_v41, %v521_v40  ;;  %v360_v52 = vld [vmem:[%s1368_s3 + $0x80] sm:$0xff]  ;;  %v1045_v57 = vpack.c.bf16 %v524_v49, %v523_v48  ;;  %v525_v58 = vld [vmem:[%s1368_s3 + $0x118] sm:$0xff]  ;;  %v361_v62 = vld [vmem:[%s1368_s3 + $0x88] sm:$0xff] }
   0xd   :  { %1019 = vmatpush3.bf16.msra.mxu1 %v1018_v20  ;;  %1008 = vmatprep.subr.bf16.mxu0 %v1080_v0  ;;  %v526_v59 = vld [vmem:[%s1368_s3 + $0x120] sm:$0xff]  ;;  %v1030_v60 = vpack.c.bf16 %v360_v52, %v359_v51  ;;  %v362_v63 = vld [vmem:[%s1368_s3 + $0x90] sm:$0xff]  ;;  %v527_v2 = vld [vmem:[%s1368_s3 + $0x128] sm:$0xff] }
   0xe   :  { %1020 = vmatprep.subr.bf16.mxu1 %v1080_v0  ;;  %917 = vmatprep.mubr.msk.f32.mxu1 %vm1081_vm0, %v1082_v6  ;;  %v1048_v1 = vpack.c.bf16 %v526_v59, %v525_v58  ;;  %v528_v3 = vld [vmem:[%s1368_s3 + $0x130] sm:$0xff]  ;;  %v1033_v4 = vpack.c.bf16 %v362_v63, %v361_v62  ;;  %v363_v5 = vld [vmem:[%s1368_s3 + $0x98] sm:$0xff]  ;;  %v364_v7 = vld [vmem:[%s1368_s3 + $0xa0] sm:$0xff] }
   0xf   :  { %898 = vmatprep.mubr.msk.f32.mxu0 %vm1081_vm0, %v1082_v6  ;;  %v1051_v8 = vpack.c.bf16 %v528_v3, %v527_v2  ;;  %v1036_v9 = vpack.c.bf16 %v364_v7, %v363_v5  ;;  %v365_v10 = vld [vmem:[%s1368_s3 + $0xa8] sm:$0xff]  ;;  %v366_v11 = vld [vmem:[%s1368_s3 + $0xb0] sm:$0xff]  ;;  %v600_v15 = vld [vmem:[%s1368_s3 + $0x138] sm:$0xff] }
  0x10   :  { %1010 = vmatpush3.bf16.msra.mxu0 %v1009_v25  ;;  %v1039_v12 = vpack.c.bf16 %v366_v11, %v365_v10  ;;  %v601_v16 = vld [vmem:[%s1368_s3 + $0x140] sm:$0xff]  ;;  %v602_v22 = vld [vmem:[%s1368_s3 + $0x148] sm:$0xff]  ;;  %v603_v23 = vld [vmem:[%s1368_s3 + $0x150] sm:$0xff] }
  0x11   :  { %1022 = vmatpush3.bf16.msra.mxu1 %v1021_v26  ;;  %1011 = vmatprep.subr.bf16.mxu0 %v1080_v0  ;;  %v786_v17 = vld [vmem:[%s1372_s4 + $0x3] ss:$0 sm:$0xff]  ;;  %v1054_v19 = vpack.c.bf16 %v601_v16, %v600_v15  ;;  %v1057_v24 = vpack.c.bf16 %v603_v23, %v602_v22  ;;  %v604_v25 = vld [vmem:[%s1368_s3 + $0x158] sm:$0xff]  ;;  %v606_v28 = vld [vmem:[%s1368_s3 + $0x168] sm:$0xff] }
  0x12   :  { %1023 = vmatprep.subr.bf16.mxu1 %v1080_v0  ;;  %v605_v26 = vld [vmem:[%s1368_s3 + $0x160] sm:$0xff]  ;;  %v691_v36 = vld [vmem:[%s1373_s5 + $0x10] sm:$0xff]  ;;  %v694_v41 = vld [vmem:[%s1373_s5 + $0x28] sm:$0xff] }
  0x13   :  { %v1060_v27 = vpack.c.bf16 %v605_v26, %v604_v25  ;;  %v689_v34 = vld [vmem:[%s1373_s5] sm:$0xff] }
  0x14   :  { %1013 = vmatpush3.bf16.msra.mxu0 %v1012_v35  ;;  %v690_v35 = vld [vmem:[%s1373_s5 + $0x8] sm:$0xff]  ;;  %v693_v40 = vld [vmem:[%s1373_s5 + $0x20] sm:$0xff] }
  0x15   :  { %1025 = vmatpush3.bf16.msra.mxu1 %v1024_v29  ;;  %1014 = vmatprep.subr.bf16.mxu0 %v1080_v0  ;;  %v1066_v37 = vpack.c.bf16 %v690_v35, %v689_v34  ;;  %v792_v51 = vld [vmem:[%s1372_s4 + $0x4] ss:$0 sm:$0xff] }
  0x16   :  { %1026 = vmatprep.subr.bf16.mxu1 %v1080_v0 }
  0x18   :  { %1016 = vmatpush3.bf16.msra.mxu0 %v1015_v38  ;;  %v692_v38 = vld [vmem:[%s1373_s5 + $0x18] sm:$0xff] }
  0x19   :  { %1028 = vmatpush3.bf16.msra.mxu1 %v1027_v32  ;;  %1029 = vmatprep.subr.bf16.mxu0 %v1080_v0  ;;  %v784_v32 = vld [vmem:[%s1372_s4 + $0x2] ss:$0 sm:$0xff] }
  0x1a   :  { %1041 = vmatprep.subr.bf16.mxu1 %v1080_v0 }
  0xda   :  { %v101_v42 = vpop.f32.mrb[0].mxu0 }
  0xdb   :  { %v102_v43 = vadd.f32 %v780_v39, %v101_v42  ;;  %v865_v44 = vpop.f32.mrb[1].mxu0  ;;  %v1069_v39 = vpack.c.bf16 %v692_v38, %v691_v36  ;;  %v1072_v42 = vpack.c.bf16 %v694_v41, %v693_v40 }
  0xdc   :  { %v696_v44 = vld [vmem:[%s1373_s5 + $0x38] sm:$0xff] }
  0xdd   :  { %v105_v46 = vmax.f32 %v102_v43, 0.0  ;;  %v695_v43 = vld [vmem:[%s1373_s5 + $0x30] sm:$0xff] }
  0xde   :  { %v1238_v50 = vpop.f32.mrb[2].mxu0 }
  0xdf   :  { %v186_v53 = vpop.f32.mrb[0].mxu1  ;;  %918 = vmatmul.mubr.msk.f32.vlgmr.msra.gmra.mrb[2].mxu1 %vm285_vm4, %v105_v46  ;;  %v881_v54 = vpop.f32.mrb[3].mxu0  ;;  %v269_v33 = vadd.f32 %v784_v32, %v1238_v50 }
  0xe0   :  { %v187_v55 = vadd.f32 %v782_v47, %v186_v53  ;;  %v876_v56 = vpop.f32.mrb[1].mxu1  ;;  %1043 = vmatpush3.bf16.msra.mxu1 %v1042_v45  ;;  %955 = vmatprep.mubr.msk.f32.mxu1 %vm1081_vm0, %v1082_v6  ;;  %v1075_v45 = vpack.c.bf16 %v696_v44, %v695_v43 }
  0xe1   :  { %1044 = vmatprep.subr.bf16.mxu1 %v1080_v0 }
  0xe2   :  { %v190_v61 = vmax.f32 %v187_v55, 0.0  ;;  %v793_v55 = vld [vmem:[%s1372_s4 + $0x5] ss:$0 sm:$0xff] }
  0xe4   :  { %899 = vmatmul.mubr.msk.f32.vlgmr.msra.gmra.mrb[4].mxu0 %vm285_vm4, %v190_v61  ;;  %1046 = vmatpush3.bf16.msra.mxu1 %v1045_v57 }
  0xe5   :  { %1047 = vmatprep.subr.bf16.mxu1 %v1080_v0  ;;  %1031 = vmatpush3.bf16.msra.mxu0 %v1030_v60 }
  0xe6   :  { %1032 = vmatprep.subr.bf16.mxu0 %v1080_v0  ;;  %936 = vmatprep.mubr.msk.f32.mxu0 %vm1081_vm0, %v1082_v6 }
  0xe8   :  { %1049 = vmatpush3.bf16.msra.mxu1 %v1048_v1 }
  0xe9   :  { %1050 = vmatprep.subr.bf16.mxu1 %v1080_v0  ;;  %1034 = vmatpush3.bf16.msra.mxu0 %v1033_v4 }
  0xea   :  { %1035 = vmatprep.subr.bf16.mxu0 %v1080_v0 }
  0xec   :  { %1052 = vmatpush3.bf16.msra.mxu1 %v1051_v8 }
  0xed   :  { %1037 = vmatpush3.bf16.msra.mxu0 %v1036_v9  ;;  %1065 = vmatprep.subr.bf16.mxu1 %v1080_v0 }
  0xee   :  { %1038 = vmatprep.subr.bf16.mxu0 %v1080_v0 }
  0xef   :  { %956 = vmatmul.mubr.msk.f32.vlgmr.msra.gmra.mrb[4].mxu1 %vm285_vm4, %v190_v61 }
  0xf0   :  { %993 = vmatprep.mubr.msk.f32.mxu1 %vm1081_vm0, %v1082_v6  ;;  %1067 = vmatpush3.bf16.msra.mxu1 %v1066_v37 }
  0xf1   :  { %1040 = vmatpush3.bf16.msra.mxu0 %v1039_v12  ;;  %1068 = vmatprep.subr.bf16.mxu1 %v1080_v0 }
  0xf2   :  { %1053 = vmatprep.subr.bf16.mxu0 %v1080_v0 }
  0xf4   :  { %1070 = vmatpush3.bf16.msra.mxu1 %v1069_v39 }
  0xf5   :  { %1071 = vmatprep.subr.bf16.mxu1 %v1080_v0 }
  0xf8   :  { %1073 = vmatpush3.bf16.msra.mxu1 %v1072_v42 }
  0xf9   :  { %1074 = vmatprep.subr.bf16.mxu1 %v1080_v0 }
  0xfc   :  { %1076 = vmatpush3.bf16.msra.mxu1 %v1075_v45 }
 0x1b2   :  { %v444_v13 = vpop.f32.mrb[2].mxu1 }
 0x1b3   :  { %v919_v14 = vpop.f32.mrb[3].mxu1 }
 0x1b7   :  { %v355_v18 = vpop.f32.mrb[4].mxu0 }
 0x1b8   :  { %v356_v20 = vadd.f32 %v786_v17, %v355_v18  ;;  %v900_v21 = vpop.f32.mrb[5].mxu0 }
 0x1ba   :  { %937 = vmatmul.mubr.msk.f32.vlgmr.msra.gmra.mrb[6].mxu0 %vm285_vm4, %v356_v20 }
 0x1bb   :  { %1055 = vmatpush3.bf16.msra.mxu0 %v1054_v19  ;;  %974 = vmatprep.mubr.msk.f32.mxu0 %vm1081_vm0, %v1082_v6  ;;  %v607_v6 = vld [vmem:[%s1368_s3 + $0x170] sm:$0xff] }
 0x1bc   :  { %1056 = vmatprep.subr.bf16.mxu0 %v1080_v0  ;;  %v1063_v31 = vpack.c.bf16 %v607_v6, %v606_v28 }
 0x1bf   :  { %1058 = vmatpush3.bf16.msra.mxu0 %v1057_v24 }
 0x1c0   :  { %1059 = vmatprep.subr.bf16.mxu0 %v1080_v0 }
 0x1c2   :  { %v595_v29 = vpop.f32.mrb[4].mxu1 }
 0x1c3   :  { %1061 = vmatpush3.bf16.msra.mxu0 %v1060_v27  ;;  %v957_v30 = vpop.f32.mrb[5].mxu1 }
 0x1c4   :  { %1062 = vmatprep.subr.bf16.mxu0 %v1080_v0 }
 0x1c7   :  { %1064 = vmatpush3.bf16.msra.mxu0 %v1063_v31 }
 0x1ca   :  { %975 = vmatmul.mubr.msk.f32.vlgmr.msra.gmra.mrb[8].mxu0 %vm285_vm4, %v269_v33 }
 0x28d   :  { %v517_v46 = vpop.f32.mrb[6].mxu0 }
 0x28e   :  { %v518_v47 = vadd.f32 %v517_v46, %v444_v13  ;;  %v938_v48 = vpop.f32.mrb[7].mxu0 }
 0x290   :  { %v599_v49 = vadd.f32 %v595_v29, %v518_v47 }
 0x29d   :  { %v677_v50 = vpop.f32.mrb[8].mxu0 }
 0x29e   :  { %v681_v0 = vadd.f32 %v677_v50, %v599_v49  ;;  %v976_v52 = vpop.f32.mrb[9].mxu0 }
 0x2a0   :  { %v687_v53 = vadd.f32 %v792_v51, %v681_v0 }
 0x2a2   :  { %v688_v54 = vmax.f32 %v687_v53, 0.0 }
 0x2a4   :  { %994 = vmatmul.mubr.msk.f32.vlgmr.msra.gmra.mrb[6].mxu1 %vm285_vm4, %v688_v54 }
 0x377   :  { %v771_v56 = vpop.f32.mrb[6].mxu1 }
 0x378   :  { %v772_v57 = vadd.f32 %v793_v55, %v771_v56  ;;  %v995_v58 = vpop.f32.mrb[7].mxu1 }
 0x37a   :  { %775 = vst [vmem:[%s1374_s6] sm:$0xff] %v772_v57 }

</bundles_post_ra>
